<compile_context>
chip_gen: v6e
topology: v6e:2x2x1
jax: 0.10.0
libtpu: 0.0.40
codegen_flags: <defaults>
</compile_context>

<pallas_src>
import functools

import jax
import jax.numpy as jnp
import numpy as np
from jax.experimental import pallas as pl
from jax.experimental.pallas import tpu as pltpu

# ---- configs (synthetic, deterministic) -------------------------------------
D_MODEL = 32
SEQ_LEN = 8
PRED_LEN = 8
BATCH = 2

NOMINAL_CAPACITY = 1.1
MAX_ED_IN_TRAIN = 5.0
MEAN0, MEAN1 = 0.5, 1.0
STD0, STD1 = 2.0, 3.0
LOWER_LIMIT = 0.0  # self.lower_limit

# Folded normalization constants (pure Python floats, baked into the kernel).
#   pred_c = ((1 - A_c * ct^B_c) * scale_c - mean_c) / std_c
#          =  C_c - K_c * A_c * exp(B_c * log(ct))
C0 = (NOMINAL_CAPACITY - MEAN0) / STD0
K0 = NOMINAL_CAPACITY / STD0
C1 = (MAX_ED_IN_TRAIN - MEAN1) / STD1
K1 = MAX_ED_IN_TRAIN / STD1

_CT_EPS = 1e-30          # guard for log(); cost_time is cycle time (> 0) in practice
_PALLAS_MIN_BATCH = 1024  # below this, a fused XLA graph beats a pallas_call launch


# ---- kernel ------------------------------------------------------------------
def _physical_kernel(enc_ref, w_ref, b_ref, ct_ref, out_ref):
    # Shapes inside one grid step:
    #   enc_ref : (TB, D)  native dtype     w_ref : (D, 4)  same dtype as enc
    #   b_ref   : (1, 4)   f32              ct_ref: (TB, T) f32
    #   out_ref : (TB, 2*T + 4)             f32
    T = ct_ref.shape[1]

    # linear_en. Weight columns were permuted once (offline) to [A0, A1, B0, B1].
    # Accumulate in f32 regardless of input dtype.
    out4 = jnp.dot(enc_ref[...], w_ref[...],
                   preferred_element_type=jnp.float32) + b_ref[...]   # (TB, 4) f32

    # Clamp only the Bs lanes (cols 2:4) via a lane mask so the whole (TB, 4)
    # tail can be written with a single store (no concat / lane-shift temporaries).
    lane = jax.lax.broadcasted_iota(jnp.int32, out4.shape, 1)          # (TB, 4)
    tail = jnp.where(lane >= 2, jnp.maximum(out4, LOWER_LIMIT), out4)  # [A0,A1,B0c,B1c]

    a0 = out4[:, 0:1]
    a1 = out4[:, 1:2]
    b0 = tail[:, 2:3]
    b1 = tail[:, 3:4]

    # cost_time > 0: pow(ct, b) == exp(b * log(ct)); log computed once, shared by
    # both channels (EUP saving). Tiny clamp guards log(0) -> NaN.
    log_ct = jnp.log(jnp.maximum(ct_ref[...], _CT_EPS))                # (TB, T) f32

    p0 = C0 - K0 * (a0 * jnp.exp(b0 * log_ct))                         # (TB, T)
    p1 = C1 - K1 * (a1 * jnp.exp(b1 * log_ct))                         # (TB, T)

    # Direct stores into the lane-contiguous output slab (no concatenates).
    out_ref[:, 0:T] = p0
    out_ref[:, T:2 * T] = p1
    out_ref[:, 2 * T:2 * T + 4] = tail


# ---- one-time parameter prep (hoisted out of the per-call path) ---------------
def prepare_params(w, b):
    """Permute torch-layout (4, D) weight / (4,) bias into kernel layout.

    PyTorch: out.reshape(B,2,2)[:,:,0] -> cols {0,2} (As), [:,:,1] -> cols {1,3} (Bs).
    We reorder the output columns to [A0, A1, B0, B1] once, offline.
    """
    perm = np.array([0, 2, 1, 3])
    w_perm = jnp.asarray(np.asarray(w).T[:, perm], jnp.float32)           # (D, 4)
    b_perm = jnp.asarray(np.asarray(b)[perm], jnp.float32).reshape(1, 4)  # (1, 4)
    return w_perm, b_perm


# ---- helpers ------------------------------------------------------------------
def _round_up(x, m):
    return ((x + m - 1) // m) * m


def _default_block_b():
    """Per-generation batch tile (rows). Tunable; chosen to fit default scoped VMEM
    with double-buffered enc blocks while amortizing the ~0.35us/step overhead."""
    try:
        kind = jax.devices()[0].device_kind.lower()
    except Exception:
        return 2048
    if "v7" in kind:
        return 8192
    if "v6" in kind:
        return 4096
    if "v5" in kind:
        return 2048
    return 2048


def _jax_forward(enc_out, cost_time, w_perm, b_perm):
    """Fused-XLA path for small batches (pallas launch would be pure overhead)."""
    B = enc_out.shape[0]
    x = enc_out.reshape(B, -1)
    out4 = jnp.dot(x, w_perm.astype(x.dtype),
                   preferred_element_type=jnp.float32) + b_perm.reshape(-1)
    As = out4[:, 0:2]
    Bs = jnp.maximum(out4[:, 2:4], LOWER_LIMIT)
    ct = cost_time.astype(jnp.float32)
    log_ct = jnp.log(jnp.maximum(ct, _CT_EPS))
    p0 = C0 - K0 * (As[:, 0:1] * jnp.exp(Bs[:, 0:1] * log_ct))
    p1 = C1 - K1 * (As[:, 1:2] * jnp.exp(Bs[:, 1:2] * log_ct))
    pred = jnp.stack([p0, p1], axis=-1)                                 # (B, T, 2)
    return pred, As[:, None, :], Bs[:, None, :]


# ---- wrapper -----------------------------------------------------------------
def physical_forward(enc_out, cost_time, w_perm, b_perm, *,
                     block_b=None, use_pallas=None):
    """enc_out: (B, seq_len, d_model); cost_time: (B, T); prepped params.

    Returns (pred (B,T,2), As (B,1,2), Bs (B,1,2)) matching the torch module.
    """
    B = enc_out.shape[0]
    if use_pallas is None:
        use_pallas = B >= _PALLAS_MIN_BATCH
    if not use_pallas:
        return _jax_forward(enc_out, cost_time, w_perm, b_perm)

    # No f32 upcast of enc: keep its native dtype (bf16 halves the dominant HBM
    # read); cast the tiny weight to match. cost_time math stays f32.
    enc_flat = enc_out.reshape(B, -1)                                   # (B, D)
    D = enc_flat.shape[1]
    ct = cost_time.astype(jnp.float32)                                  # (B, T)
    T = ct.shape[1]
    out_w = 2 * T + 4
    w = w_perm.astype(enc_flat.dtype)

    # ---- batch tiling: pad B up to a multiple of block_b (no full-batch fallback).
    if block_b is None:
        block_b = _default_block_b()
    b_pad8 = _round_up(B, 8)
    block_b = _round_up(min(block_b, b_pad8), 8)
    n_blocks = pl.cdiv(b_pad8, block_b)
    # If a single block would cover the whole (padded) batch but it's big enough,
    # split into 2 so the "parallel" axis can shard across v7x's two TensorCores.
    if n_blocks == 1 and b_pad8 >= 16:
        block_b = _round_up(pl.cdiv(b_pad8, 2), 8)
        n_blocks = pl.cdiv(b_pad8, block_b)
    B_padded = n_blocks * block_b

    if B_padded != B:
        pad = B_padded - B
        enc_flat = jnp.pad(enc_flat, ((0, pad), (0, 0)))
        # pad cost_time with 1.0 so log() of the dead rows is finite.
        ct = jnp.pad(ct, ((0, pad), (0, 0)), constant_values=1.0)

    slab = pl.pallas_call(
        _physical_kernel,
        out_shape=jax.ShapeDtypeStruct((B_padded, out_w), jnp.float32),
        grid=(n_blocks,),
        in_specs=[
            pl.BlockSpec((block_b, D), lambda i: (i, 0)),   # activations (tiled on B)
            pl.BlockSpec((D, 4), lambda i: (0, 0)),         # weight (resident)
            pl.BlockSpec((1, 4), lambda i: (0, 0)),         # bias (resident)
            pl.BlockSpec((block_b, T), lambda i: (i, 0)),   # cost_time (tiled on B)
        ],
        out_specs=pl.BlockSpec((block_b, out_w), lambda i: (i, 0)),
        compiler_params=pltpu.CompilerParams(
            dimension_semantics=("parallel",)),
    )(enc_flat, w, b_perm, ct)

    slab = slab[:B]
    pred0 = slab[:, :T]
    pred1 = slab[:, T:2 * T]
    As = slab[:, 2 * T:2 * T + 2]
    Bs = slab[:, 2 * T + 2:2 * T + 4]
    pred = jnp.stack([pred0, pred1], axis=-1)                           # (B, T, 2)
    return pred, As[:, None, :], Bs[:, None, :]                         # (B, 1, 2) each


# ---- plain-JAX reference (for correctness check, torch-layout params) ----------
def reference_forward(enc_out, cost_time, w, b):
    B = enc_out.shape[0]
    out = enc_out.reshape(B, -1) @ w.T + b                              # (B, 4)
    out = out.reshape(B, 2, 2)
    As = out[:, :, 0][:, None, :]                                       # (B, 1, 2)
    Bs = jnp.maximum(out[:, :, 1][:, None, :], LOWER_LIMIT)             # (B, 1, 2)
    scale = jnp.array([NOMINAL_CAPACITY, MAX_ED_IN_TRAIN], jnp.float32)
    ct = cost_time[:, :, None]                                          # (B, T, 1)
    pred = (1.0 - As * ct ** Bs) * scale                                # (B, T, 2)
    mean = jnp.array([MEAN0, MEAN1], jnp.float32)
    std = jnp.array([STD0, STD1], jnp.float32)
    pred = (pred - mean) / std
    return pred, As, Bs


if __name__ == "__main__":
    key = jax.random.PRNGKey(0)
    k_enc, k_ct, k_w, k_enc2, k_ct2 = jax.random.split(key, 5)

    D = D_MODEL * SEQ_LEN
    T = SEQ_LEN + PRED_LEN

    # linear_en: xavier_normal_ weight (gain=1), zero bias.
    xavier_std = float(np.sqrt(2.0 / (D + 4)))
    w_en = jax.random.normal(k_w, (4, D), jnp.float32) * xavier_std
    b_en = jnp.zeros((4,), jnp.float32)
    w_perm, b_perm = prepare_params(w_en, b_en)

    def _check(pred, As, Bs, pred_r, As_r, Bs_r):
        np.testing.assert_allclose(np.asarray(pred), np.asarray(pred_r), rtol=1e-4, atol=1e-4)
        np.testing.assert_allclose(np.asarray(As), np.asarray(As_r), rtol=1e-4, atol=1e-4)
        np.testing.assert_allclose(np.asarray(Bs), np.asarray(Bs_r), rtol=1e-4, atol=1e-4)

    # --- 1) Pallas path, tiny batch (forced), single block -----------------------
    enc_out = jax.random.normal(k_enc, (BATCH, SEQ_LEN, D_MODEL), jnp.float32)
    cost_time = jax.random.uniform(k_ct, (BATCH, T), jnp.float32, 0.5, 5.0)

    fwd_pallas = jax.jit(functools.partial(physical_forward, use_pallas=True))
    pred, As, Bs = fwd_pallas(enc_out, cost_time, w_perm, b_perm)
    jax.block_until_ready((pred, As, Bs))
    _check(pred, As, Bs, *reference_forward(enc_out, cost_time, w_en, b_en))

    # --- 2) Pallas path, non-multiple batch -> exercises padding + 2-block grid ---
    B2 = 20
    enc_out2 = jax.random.normal(k_enc2, (B2, SEQ_LEN, D_MODEL), jnp.float32)
    cost_time2 = jax.random.uniform(k_ct2, (B2, T), jnp.float32, 0.5, 5.0)
    pred2, As2, Bs2 = fwd_pallas(enc_out2, cost_time2, w_perm, b_perm)
    jax.block_until_ready((pred2, As2, Bs2))
    _check(pred2, As2, Bs2, *reference_forward(enc_out2, cost_time2, w_en, b_en))

    # --- 3) Auto dispatch (tiny batch -> fused XLA path) --------------------------
    pred3, As3, Bs3 = jax.jit(physical_forward)(enc_out, cost_time, w_perm, b_perm)
    jax.block_until_ready((pred3, As3, Bs3))
    _check(pred3, As3, Bs3, *reference_forward(enc_out, cost_time, w_en, b_en))

    print("KERNEL_OK")
</pallas_src>

<mosaic_0001>
module attributes {stable_mosaic.version = 11 : i64} {
  func.func @_physical_kernel(%arg0: i32, %arg1: memref<8x256xf32, #tpu.memory_space<vmem>>, %arg2: memref<256x4xf32, #tpu.memory_space<vmem>>, %arg3: memref<1x4xf32, #tpu.memory_space<vmem>>, %arg4: memref<8x16xf32, #tpu.memory_space<vmem>>, %arg5: memref<8x36xf32, #tpu.memory_space<vmem>>) attributes {dimension_semantics = [#tpu.dimension_semantics<parallel>], iteration_bounds = array<i64: 1>, scalar_prefetch = 0 : i64, scratch_operands = 0 : i64, tpu.core_type = #tpu.core_type<tc>, window_params = [{transform_indices = @transform_0, window_bounds = array<i64: 8, 256>}, {pipeline_mode = #tpu.pipeline_mode<synchronous>, transform_indices = @transform_1, window_bounds = array<i64: 256, 4>}, {pipeline_mode = #tpu.pipeline_mode<synchronous>, transform_indices = @transform_2, window_bounds = array<i64: 1, 4>}, {transform_indices = @transform_3, window_bounds = array<i64: 8, 16>}, {transform_indices = @transform_4, window_bounds = array<i64: 8, 36>}]} {
    %c0 = arith.constant 0 : index
    %c0_0 = arith.constant 0 : index
    %0 = vector.load %arg1[%c0, %c0_0] : memref<8x256xf32, #tpu.memory_space<vmem>>, vector<8x256xf32>
    %c0_1 = arith.constant 0 : index
    %c0_2 = arith.constant 0 : index
    %1 = vector.load %arg2[%c0_1, %c0_2] : memref<256x4xf32, #tpu.memory_space<vmem>>, vector<256x4xf32>
    %cst = arith.constant dense<0.000000e+00> : vector<8x4xf32>
    %2 = tpu.matmul %0, %1, %cst {dimension_numbers = #tpu.dot_dimension_numbers<[1], [0], [0], [1], [0, 0, 1, 1], [], []>} : vector<8x256xf32>, vector<256x4xf32>, vector<8x4xf32> -> vector<8x4xf32>
    %c0_3 = arith.constant 0 : index
    %c0_4 = arith.constant 0 : index
    %3 = vector.load %arg3[%c0_3, %c0_4] : memref<1x4xf32, #tpu.memory_space<vmem>>, vector<1x4xf32>
    %4 = vector.broadcast %3 : vector<1x4xf32> to vector<8x4xf32>
    %5 = arith.addf %2, %4 : vector<8x4xf32>
    %6 = tpu.iota {dimensions = array<i32: 1>} : vector<8x4xi32>
    %c2_i32 = arith.constant 2 : i32
    %7 = vector.broadcast %c2_i32 : i32 to vector<8x4xi32>
    %8 = arith.cmpi sge, %6, %7 : vector<8x4xi32>
    %cst_5 = arith.constant 0.000000e+00 : f32
    %9 = vector.broadcast %cst_5 : f32 to vector<8x4xf32>
    %10 = arith.maximumf %5, %9 : vector<8x4xf32>
    %11 = arith.select %8, %10, %5 : vector<8x4xi1>, vector<8x4xf32>
    %12 = vector.extract_strided_slice %5 {offsets = [0, 0], sizes = [8, 1], strides = [1, 1]} : vector<8x4xf32> to vector<8x1xf32>
    %13 = vector.extract_strided_slice %5 {offsets = [0, 1], sizes = [8, 1], strides = [1, 1]} : vector<8x4xf32> to vector<8x1xf32>
    %14 = vector.extract_strided_slice %11 {offsets = [0, 2], sizes = [8, 1], strides = [1, 1]} : vector<8x4xf32> to vector<8x1xf32>
    %15 = vector.extract_strided_slice %11 {offsets = [0, 3], sizes = [8, 1], strides = [1, 1]} : vector<8x4xf32> to vector<8x1xf32>
    %c0_6 = arith.constant 0 : index
    %c0_7 = arith.constant 0 : index
    %16 = vector.load %arg4[%c0_6, %c0_7] : memref<8x16xf32, #tpu.memory_space<vmem>>, vector<8x16xf32>
    %cst_8 = arith.constant 1.000000e-30 : f32
    %17 = vector.broadcast %cst_8 : f32 to vector<8x16xf32>
    %18 = arith.maximumf %16, %17 : vector<8x16xf32>
    %19 = math.log %18 : vector<8x16xf32>
    %20 = vector.broadcast %14 : vector<8x1xf32> to vector<8x16xf32>
    %21 = arith.mulf %20, %19 : vector<8x16xf32>
    %22 = math.exp %21 : vector<8x16xf32>
    %23 = vector.broadcast %12 : vector<8x1xf32> to vector<8x16xf32>
    %24 = arith.mulf %23, %22 : vector<8x16xf32>
    %cst_9 = arith.constant 5.500000e-01 : f32
    %25 = vector.broadcast %cst_9 : f32 to vector<8x16xf32>
    %26 = arith.mulf %25, %24 : vector<8x16xf32>
    %cst_10 = arith.constant 3.000000e-01 : f32
    %27 = vector.broadcast %cst_10 : f32 to vector<8x16xf32>
    %28 = arith.subf %27, %26 : vector<8x16xf32>
    %29 = vector.broadcast %15 : vector<8x1xf32> to vector<8x16xf32>
    %30 = arith.mulf %29, %19 : vector<8x16xf32>
    %31 = math.exp %30 : vector<8x16xf32>
    %32 = vector.broadcast %13 : vector<8x1xf32> to vector<8x16xf32>
    %33 = arith.mulf %32, %31 : vector<8x16xf32>
    %cst_11 = arith.constant 1.66666663 : f32
    %34 = vector.broadcast %cst_11 : f32 to vector<8x16xf32>
    %35 = arith.mulf %34, %33 : vector<8x16xf32>
    %cst_12 = arith.constant 1.33333337 : f32
    %36 = vector.broadcast %cst_12 : f32 to vector<8x16xf32>
    %37 = arith.subf %36, %35 : vector<8x16xf32>
    %c0_13 = arith.constant 0 : index
    %c0_14 = arith.constant 0 : index
    %38 = vector.load %arg5[%c0_13, %c0_14] : memref<8x36xf32, #tpu.memory_space<vmem>>, vector<8x16xf32>
    tpu.vector_store %arg5[%c0_13, %c0_14], %28 {strides = array<i32>} : memref<8x36xf32, #tpu.memory_space<vmem>>, vector<8x16xf32>,
    %c0_15 = arith.constant 0 : index
    %c16 = arith.constant 16 : index
    %39 = vector.load %arg5[%c0_15, %c16] : memref<8x36xf32, #tpu.memory_space<vmem>>, vector<8x16xf32>
    tpu.vector_store %arg5[%c0_15, %c16], %37 {strides = array<i32>} : memref<8x36xf32, #tpu.memory_space<vmem>>, vector<8x16xf32>,
    %c0_16 = arith.constant 0 : index
    %c32 = arith.constant 32 : index
    %40 = vector.load %arg5[%c0_16, %c32] : memref<8x36xf32, #tpu.memory_space<vmem>>, vector<8x4xf32>
    tpu.vector_store %arg5[%c0_16, %c32], %11 {strides = array<i32>} : memref<8x36xf32, #tpu.memory_space<vmem>>, vector<8x4xf32>,
    return
  }
  func.func @transform_0(%arg0: i32) -> (i32, i32) {
    %c0_i32 = arith.constant 0 : i32
    %c0_i32_0 = arith.constant 0 : i32
    return %arg0, %c0_i32 : i32, i32
  }
  func.func @transform_1(%arg0: i32) -> (i32, i32) {
    %c0_i32 = arith.constant 0 : i32
    %c0_i32_0 = arith.constant 0 : i32
    %c0_i32_1 = arith.constant 0 : i32
    return %c0_i32, %c0_i32_0 : i32, i32
  }
  func.func @transform_2(%arg0: i32) -> (i32, i32) {
    %c0_i32 = arith.constant 0 : i32
    %c0_i32_0 = arith.constant 0 : i32
    %c0_i32_1 = arith.constant 0 : i32
    return %c0_i32, %c0_i32_0 : i32, i32
  }
  func.func @transform_3(%arg0: i32) -> (i32, i32) {
    %c0_i32 = arith.constant 0 : i32
    %c0_i32_0 = arith.constant 0 : i32
    return %arg0, %c0_i32 : i32, i32
  }
  func.func @transform_4(%arg0: i32) -> (i32, i32) {
    %c0_i32 = arith.constant 0 : i32
    %c0_i32_0 = arith.constant 0 : i32
    return %arg0, %c0_i32 : i32, i32
  }
}

</mosaic_0001>

<bundles_post_ra>
// kernel: physical_forward.1
= control target key start
LH: loop header
LB: loop body
LE: loop exit
PB: predicated region body
PF: predicated region fallthrough
CT: control target
= control target key end

     0   :  { %v236_v34 = vmov 3   ;;  %v237_v35 = vmov 2   ;;  %v128_v36 = vlaneseq  ;;  %v238_v45 = vmov 0   ;;  %s241_s8 = smov 16   ;;  %s384_s1 = inlined_call_operand.vmem [shape: f32[256,4], index: 1, kind: input, shape index: {}]   ;;  %s385_s0 = inlined_call_operand.vmem [shape: f32[8,256], index: 0, kind: input, shape index: {}]   ;;  %s386_s2 = inlined_call_operand.vmem [shape: f32[1,4], index: 2, kind: input, shape index: {}]   ;;  %s387_s3 = inlined_call_operand.vmem [shape: f32[8,16], index: 3, kind: input, shape index: {}]   ;;  %s388_s4 = inlined_call_operand.vmem [shape: f32[8,36], index: 4, kind: output, shape index: {}]  }
   0x1   :  { %v50_v0 = vld [vmem:[%s384_s1 + $0xf8] sm:$0xff]  ;;  %v49_v2 = vld [vmem:[%s384_s1 + $0xf0] sm:$0xff]  ;;  %v48_v4 = vld [vmem:[%s384_s1 + $0xe8] sm:$0xff]  ;;  %226 = vset.pattern.permute.xlu0 %v236_v34  ;;  %228 = vset.pattern.permute.xlu1 %v237_v35  ;;  %v239_v46 = vmov 1   ;;  %vm167_vm1 = vcmask 130048   ;;  %vm173_vm2 = vcmask 261248  }
   0x2   :  { %v34_v1 = vld [vmem:[%s384_s1 + $0x78] sm:$0xff]  ;;  %185 = vmatprep.subr.mxu0 %v50_v0  ;;  %v33_v3 = vld [vmem:[%s384_s1 + $0x70] sm:$0xff]  ;;  %v32_v5 = vld [vmem:[%s384_s1 + $0x68] sm:$0xff]  ;;  %v129_v40 = vand.u32 127, %v128_v36  ;;  %vm178_vm3 = vcmask 294144  }
   0x3   :  { %186 = vmatpush3.msra.mxu0 %v34_v1  ;;  %v47_v6 = vld [vmem:[%s384_s1 + $0xe0] sm:$0xff]  ;;  %v46_v8 = vld [vmem:[%s384_s1 + $0xd8] sm:$0xff]  ;;  %v45_v10 = vld [vmem:[%s384_s1 + $0xd0] sm:$0xff] }
   0x4   :  { %187 = vmatprep.subr.mxu0 %v49_v2  ;;  %v31_v7 = vld [vmem:[%s384_s1 + $0x60] sm:$0xff]  ;;  %v30_v9 = vld [vmem:[%s384_s1 + $0x58] sm:$0xff]  ;;  %v29_v11 = vld [vmem:[%s384_s1 + $0x50] sm:$0xff]  ;;  %vm130_vm0 = vcmp.ge.s32.totalorder %v129_v40, 2 }
   0x5   :  { %188 = vmatpush3.msra.mxu0 %v33_v3  ;;  %v44_v12 = vld [vmem:[%s384_s1 + $0xc8] sm:$0xff]  ;;  %v43_v15 = vld [vmem:[%s384_s1 + $0xc0] sm:$0xff]  ;;  %v42_v17 = vld [vmem:[%s384_s1 + $0xb8] sm:$0xff] }
   0x6   :  { %189 = vmatprep.subr.mxu0 %v48_v4  ;;  %v18_v13 = vld [vmem:[%s385_s0 + $0x8] sm:$0xff]  ;;  %v27_v16 = vld [vmem:[%s384_s1 + $0x40] sm:$0xff]  ;;  %v26_v18 = vld [vmem:[%s384_s1 + $0x38] sm:$0xff] }
   0x7   :  { %190 = vmatpush3.msra.mxu0 %v32_v5  ;;  %v28_v14 = vld [vmem:[%s384_s1 + $0x48] sm:$0xff]  ;;  %122 = vmatprep.mubr.f32.mxu0 %v18_v13  ;;  %v41_v19 = vld [vmem:[%s384_s1 + $0xb0] sm:$0xff]  ;;  %v39_v23 = vld [vmem:[%s384_s1 + $0xa0] sm:$0xff] }
   0x8   :  { %191 = vmatprep.subr.mxu0 %v47_v6  ;;  %v25_v20 = vld [vmem:[%s384_s1 + $0x30] sm:$0xff]  ;;  %v40_v21 = vld [vmem:[%s384_s1 + $0xa8] sm:$0xff]  ;;  %v23_v24 = vld [vmem:[%s384_s1 + $0x20] sm:$0xff] }
   0x9   :  { %192 = vmatpush3.msra.mxu0 %v31_v7  ;;  %v24_v22 = vld [vmem:[%s384_s1 + $0x28] sm:$0xff]  ;;  %v38_v25 = vld [vmem:[%s384_s1 + $0x98] sm:$0xff]  ;;  %v37_v27 = vld [vmem:[%s384_s1 + $0x90] sm:$0xff] }
   0xa   :  { %193 = vmatprep.subr.mxu0 %v46_v8  ;;  %v22_v26 = vld [vmem:[%s384_s1 + $0x18] sm:$0xff]  ;;  %v21_v28 = vld [vmem:[%s384_s1 + $0x10] sm:$0xff]  ;;  %v36_v29 = vld [vmem:[%s384_s1 + $0x88] sm:$0xff] }
   0xb   :  { %194 = vmatpush3.msra.mxu0 %v30_v9  ;;  %v20_v30 = vld [vmem:[%s384_s1 + $0x8] sm:$0xff]  ;;  %v35_v31 = vld [vmem:[%s384_s1 + $0x80] sm:$0xff] }
   0xc   :  { %195 = vmatprep.subr.mxu0 %v45_v10  ;;  %v19_v32 = vld [vmem:[%s384_s1] sm:$0xff] }
   0xd   :  { %196 = vmatpush3.msra.mxu0 %v29_v11  ;;  %v17_v33 = vld [vmem:[%s385_s0] sm:$0xff]  ;;  %s240_s0 = smov 32  }
   0xe   :  { %197 = vmatprep.subr.mxu0 %v44_v12  ;;  %v184_v38 = vld [vmem:[%s386_s2] ss:$0 sm:$0xff] }
   0xf   :  { %198 = vmatpush3.msra.mxu0 %v28_v14  ;;  %v133_v47 = vld [vmem:[%s387_s3] sm:$0xff] }
  0x10   :  { %199 = vmatprep.subr.mxu0 %v43_v15  ;;  %v134_v48 = vmax.f32 %v133_v47, 1e-30 }
  0x11   :  { %200 = vmatpush3.msra.mxu0 %v27_v16 }
  0x12   :  { %201 = vmatprep.subr.mxu0 %v42_v17  ;;  %230 = vlog2.f32 %v134_v48 }
  0x13   :  { %202 = vmatpush3.msra.mxu0 %v26_v18 }
  0x14   :  { %203 = vmatprep.subr.mxu0 %v41_v19 }
  0x15   :  { %204 = vmatpush3.msra.mxu0 %v25_v20 }
  0x16   :  { %205 = vmatprep.subr.mxu0 %v40_v21 }
  0x17   :  { %206 = vmatpush3.msra.mxu0 %v24_v22 }
  0x18   :  { %207 = vmatprep.subr.mxu0 %v39_v23 }
  0x19   :  { %208 = vmatpush3.msra.mxu0 %v23_v24 }
  0x1a   :  { %209 = vmatprep.subr.mxu0 %v38_v25 }
  0x1b   :  { %210 = vmatpush3.msra.mxu0 %v22_v26 }
  0x1c   :  { %211 = vmatprep.subr.mxu0 %v37_v27 }
  0x1d   :  { %212 = vmatpush3.msra.mxu0 %v21_v28 }
  0x1e   :  { %213 = vmatprep.subr.mxu0 %v36_v29 }
  0x1f   :  { %214 = vmatpush3.msra.mxu0 %v20_v30  ;;  %v231_v49 = vpop.eup %230 }
  0x20   :  { %215 = vmatprep.subr.mxu0 %v35_v31  ;;  %v136_v50 = vmul.f32 0.6931472, %v231_v49 }
  0x21   :  { %216 = vmatpush3.msra.mxu0 %v19_v32 }
  0x22   :  { %123 = vmatmul.mubr.f32.vlgmr.msra.gmra.mxu0 %v17_v33 }
  0xe2   :  { %v217_v37 = vpop.f32.mrf.mxu0 }
  0xe4   :  { %v218_v39 = vpop.f32.mrf.mxu0 }
  0xe5   :  { %v219_v41 = vadd.f32 %v218_v39, %v217_v37 }
  0xe7   :  { %v125_v42 = vadd.f32 %v219_v41, %v184_v38 }
  0xe9   :  { %v131_v43 = vmax.f32 %v125_v42, 0.0 }
  0xeb   :  { %v132_v44 = vsel %vm130_vm0, %v131_v43, %v125_v42 }
  0xec   :  { %139 = vperm.xlu1 %228, %v132_v44   ;;  %154 = vperm.xlu0 %226, %v132_v44  }
  0xf0   :  { %229 = vset.pattern.permute.xlu1 %v238_v45  ;;  %227 = vset.pattern.permute.xlu0 %v239_v46 }
  0xf1   :  { %147 = vperm.xlu1 %229, %v125_v42   ;;  %161 = vperm.xlu0 %227, %v125_v42  }
  0xf5   :  { %175 = vrot.lane.b32.xlu0 %v132_v44, %s240_s0 }
 0x167   :  { %v140_v51 = vpop.permute.xlu1 %139  ;;  %v155_v52 = vpop.permute.xlu0 %154 }
 0x168   :  { %v142_v53 = vmul.f32 %v140_v51, %v136_v50  ;;  %v157_v54 = vmul.f32 %v155_v52, %v136_v50 }
 0x16a   :  { %v143_v55 = vmul.f32 1.442695, %v142_v53  ;;  %v158_v56 = vmul.f32 1.442695, %v157_v54 }
 0x16c   :  { %232 = vpow2.f32 %v143_v55  ;;  %v148_v58 = vpop.permute.xlu1 %147  ;;  %v162_v61 = vpop.permute.xlu0 %161 }
 0x16d   :  { %234 = vpow2.f32 %v158_v56 }
 0x170   :  { %v176_v4 = vpop.permute.xlu0 %175 }
 0x179   :  { %v233_v57 = vpop.eup %232 }
 0x17a   :  { %v235_v59 = vpop.eup %234  ;;  %v150_v60 = vmul.f32 %v233_v57, %v148_v58 }
 0x17b   :  { %v164_v62 = vmul.f32 %v235_v59, %v162_v61 }
 0x17c   :  { %v151_v63 = vmul.f32 0.55, %v150_v60 }
 0x17d   :  { %v165_v0 = vmul.f32 1.6666666, %v164_v62 }
 0x17e   :  { %v152_v1 = vsub.f32 0.3, %v151_v63 }
 0x17f   :  { %v166_v2 = vsub.f32 1.3333334, %v165_v0 }
 0x180   :  { %168 = vst.msk [vmem:[%s388_s4] sm:$0xff] %vm167_vm1, %v152_v1 }
 0x181   :  { %170 = vrot.lane.b32.xlu1 %v166_v2, %s241_s8 }
 0x1f3   :  { %v171_v3 = vpop.permute.xlu1 %170 }
 0x1f4   :  { %174 = vst.msk [vmem:[%s388_s4] sm:$0xff] %vm173_vm2, %v171_v3 }
 0x1f5   :  { %179 = vst.msk [vmem:[%s388_s4] sm:$0xff] %vm178_vm3, %v176_v4 }

</bundles_post_ra>
